<compile_context>
chip_gen: v5e
topology: v5e:2x2
jax: 0.10.0
libtpu: 0.0.40
codegen_flags: <defaults>
</compile_context>

<pallas_src>
import functools

import jax
import jax.numpy as jnp
import numpy as np
from jax import lax
from jax.experimental import pallas as pl
from jax.experimental.pallas import tpu as pltpu

IN_DIM = 24
H1, H2 = 10, 10
OUT_DIM = 24
EPS = 1e-6


def _layernorm_cols(h, alpha, beta, eps=EPS):
    """LayerNorm over the feature axis (axis 0); columns are samples.

    Matches the torch module: unbiased std (N-1) and eps added to the std.
    """
    d = h.shape[0]
    mu = jnp.mean(h, axis=0, keepdims=True)
    var = jnp.sum((h - mu) ** 2, axis=0, keepdims=True) / (d - 1)
    inv = pl.reciprocal(jnp.sqrt(var) + eps)   # exact (keeps 1e-5 tolerance)
    return (h - mu) * inv * alpha + beta


def feedforward_kernel(w1_ref, w2_ref, w3_ref, vec_ref, t_ref, o_ref):
    hp = lax.Precision.HIGHEST
    t = t_ref[...].astype(jnp.float32)     # (block_b, IN_DIM) native layout
    vec = vec_ref[...]                     # (OUT_DIM, 8) packed small vectors
    b1, a1, be1 = vec[:H1, 0:1], vec[:H1, 1:2], vec[:H1, 2:3]
    b2, a2, be2 = vec[:H2, 3:4], vec[:H2, 4:5], vec[:H2, 5:6]
    b3 = vec[:, 6:7]                       # (OUT_DIM, 1)

    # Layer 1: (H1, IN_DIM) x (block_b, IN_DIM)^T -> (H1, block_b).
    # MXU handles the transposed streaming operand, so no wrapper/XLU
    # transpose of t is needed; result is lane-dense (batch on lanes).
    h = lax.dot_general(w1_ref[...], t, (((1,), (1,)), ((), ())),
                        precision=hp,
                        preferred_element_type=jnp.float32) + b1
    h = h + _layernorm_cols(h, a1, be1)
    h = jnp.maximum(h, 0.0)

    # Layer 2 + residual LayerNorm + relu (lane-dense).
    h = jnp.dot(w2_ref[...], h, precision=hp,
                preferred_element_type=jnp.float32) + b2
    h = h + _layernorm_cols(h, a2, be2)
    h = jnp.maximum(h, 0.0)

    # Output layer, still lane-dense, then one in-kernel transpose so the HBM
    # side keeps the module's native (batch, feature) layout (no wrapper
    # transpose => no extra HBM round-trip).
    out_t = jnp.dot(w3_ref[...], h, precision=hp,
                    preferred_element_type=jnp.float32) + b3
    o_ref[...] = out_t.T.astype(o_ref.dtype)


def _default_block_b(B):
    """Rows (samples) handled per grid step.

    Single block for tiny B; otherwise 128-row-aligned blocks chosen so the
    1-D "parallel" grid has an even number of steps (v7x: two TensorCores
    share that axis), grows to >=4..16 steps for large B (DMA/compute
    overlap), and blocks are capped at 8192 rows (in+out VMEM, including the
    128-lane padding of the narrow tiles, ~16 MiB double-buffered -- within
    the 32 MiB limit we request on every TPU generation).
    """
    if B < 256:
        return B                           # single block: dims == array dims
    target_steps = max(2, min(16, B // 2048))
    if target_steps % 2:
        target_steps += 1                  # even number of steps for v7x
    blk = -(-B // target_steps)            # ceil
    blk = -(-blk // 128) * 128             # round up to a multiple of 128
    return max(128, min(blk, 8192))


@functools.partial(jax.jit, static_argnames=("block_b",))
def feedforward(t, params, block_b=None):
    (w1, b1, a1, be1, w2, b2, a2, be2, w3, b3) = params
    w1 = w1.astype(jnp.float32)
    w2 = w2.astype(jnp.float32)
    w3 = w3.astype(jnp.float32)
    B = t.shape[0]
    if block_b is None:
        block_b = _default_block_b(B)

    # Pack the seven tiny per-feature vectors into one (OUT_DIM, 8) array:
    # columns = [b1, a1, be1, b2, a2, be2, b3, 0], zero-padded to OUT_DIM rows.
    def col(v):
        return jnp.pad(v.astype(jnp.float32), (0, OUT_DIM - v.shape[0]))
    vec = jnp.stack([col(b1), col(a1), col(be1),
                     col(b2), col(a2), col(be2),
                     col(b3), jnp.zeros((OUT_DIM,), jnp.float32)], axis=1)

    grid = (pl.cdiv(B, block_b),)

    def rep(arr):
        return pl.BlockSpec(arr.shape, lambda i: (0, 0))

    flops = 2 * B * (IN_DIM * H1 + H1 * H2 + H2 * OUT_DIM)
    bytes_accessed = (B * (IN_DIM + OUT_DIM) * 4
                      + (w1.size + w2.size + w3.size + vec.size) * 4)
    cost = pl.CostEstimate(flops=flops, transcendentals=4 * B,
                           bytes_accessed=bytes_accessed)

    out = pl.pallas_call(
        feedforward_kernel,
        out_shape=jax.ShapeDtypeStruct((B, OUT_DIM), t.dtype),
        grid_spec=pltpu.PrefetchScalarGridSpec(
            num_scalar_prefetch=0,
            grid=grid,
            in_specs=[rep(w1), rep(w2), rep(w3), rep(vec),
                      pl.BlockSpec((block_b, IN_DIM), lambda i: (i, 0))],
            out_specs=pl.BlockSpec((block_b, OUT_DIM), lambda i: (i, 0)),
        ),
        compiler_params=pltpu.CompilerParams(
            dimension_semantics=("parallel",),
            vmem_limit_bytes=32 * 1024 * 1024),
        cost_estimate=cost,
    )(w1, w2, w3, vec, t)

    return out                             # already (B, OUT_DIM); no transpose


def feedforward_ref(t, params):
    (w1, b1, a1, be1, w2, b2, a2, be2, w3, b3) = params
    hp = lax.Precision.HIGHEST

    def ln(h, alpha, beta):
        d = h.shape[-1]
        mu = jnp.mean(h, axis=-1, keepdims=True)
        var = jnp.sum((h - mu) ** 2, axis=-1, keepdims=True) / (d - 1)
        std = jnp.sqrt(var) + EPS
        return (h - mu) / std * alpha + beta

    h = jnp.dot(t, w1.T, precision=hp) + b1
    h = h + ln(h, a1, be1)
    h = jnp.maximum(h, 0.0)
    h = jnp.dot(h, w2.T, precision=hp) + b2
    h = h + ln(h, a2, be2)
    h = jnp.maximum(h, 0.0)
    return jnp.dot(h, w3.T, precision=hp) + b3


def init_params(key):
    ks = jax.random.split(key, 10)
    # torch-native Linear layout: W is (out_features, in_features), b is (out,)
    w1 = jax.random.normal(ks[0], (H1, IN_DIM), jnp.float32) * 0.2
    b1 = jax.random.normal(ks[1], (H1,), jnp.float32) * 0.1
    w2 = jax.random.normal(ks[2], (H2, H1), jnp.float32) * 0.2
    b2 = jax.random.normal(ks[3], (H2,), jnp.float32) * 0.1
    w3 = jax.random.normal(ks[4], (OUT_DIM, H2), jnp.float32) * 0.2
    b3 = jax.random.normal(ks[5], (OUT_DIM,), jnp.float32) * 0.1
    # LayerNorm affine params (torch.randn(d))
    a1 = jax.random.normal(ks[6], (H1,), jnp.float32)
    be1 = jax.random.normal(ks[7], (H1,), jnp.float32)
    a2 = jax.random.normal(ks[8], (H2,), jnp.float32)
    be2 = jax.random.normal(ks[9], (H2,), jnp.float32)
    return (w1, b1, a1, be1, w2, b2, a2, be2, w3, b3)


if __name__ == "__main__":
    key = jax.random.PRNGKey(0)
    kp, kx1, kx2 = jax.random.split(key, 3)
    params = init_params(kp)

    # Single-block path.
    B = 128
    t = jax.random.normal(kx1, (B, IN_DIM), jnp.float32)
    out = jax.block_until_ready(feedforward(t, params))
    ref = feedforward_ref(t, params)
    np.testing.assert_allclose(np.asarray(out), np.asarray(ref),
                               rtol=1e-5, atol=1e-5)

    # Multi-step "parallel" grid with a partial tail block
    # (block_b=256 -> one full 256-row block + one 128-row tail block).
    B2 = 384
    t2 = jax.random.normal(kx2, (B2, IN_DIM), jnp.float32)
    out2 = jax.block_until_ready(feedforward(t2, params))
    ref2 = feedforward_ref(t2, params)
    np.testing.assert_allclose(np.asarray(out2), np.asarray(ref2),
                               rtol=1e-5, atol=1e-5)

    print("KERNEL_OK")
</pallas_src>

<mosaic_0001>
module attributes {stable_mosaic.version = 11 : i64} {
  func.func @feedforward_kernel(%arg0: i32, %arg1: memref<10x24xf32, #tpu.memory_space<vmem>>, %arg2: memref<10x10xf32, #tpu.memory_space<vmem>>, %arg3: memref<24x10xf32, #tpu.memory_space<vmem>>, %arg4: memref<24x8xf32, #tpu.memory_space<vmem>>, %arg5: memref<128x24xf32, #tpu.memory_space<vmem>>, %arg6: memref<128x24xf32, #tpu.memory_space<vmem>>) attributes {dimension_semantics = [#tpu.dimension_semantics<parallel>], iteration_bounds = array<i64: 1>, scalar_prefetch = 0 : i64, scratch_operands = 0 : i64, tpu.core_type = #tpu.core_type<tc>, window_params = [{pipeline_mode = #tpu.pipeline_mode<synchronous>, transform_indices = @transform_0, window_bounds = array<i64: 10, 24>}, {pipeline_mode = #tpu.pipeline_mode<synchronous>, transform_indices = @transform_1, window_bounds = array<i64: 10, 10>}, {pipeline_mode = #tpu.pipeline_mode<synchronous>, transform_indices = @transform_2, window_bounds = array<i64: 24, 10>}, {pipeline_mode = #tpu.pipeline_mode<synchronous>, transform_indices = @transform_3, window_bounds = array<i64: 24, 8>}, {transform_indices = @transform_4, window_bounds = array<i64: 128, 24>}, {transform_indices = @transform_5, window_bounds = array<i64: 128, 24>}]} {
    %c0 = arith.constant 0 : index
    %c0_0 = arith.constant 0 : index
    %0 = vector.load %arg5[%c0, %c0_0] : memref<128x24xf32, #tpu.memory_space<vmem>>, vector<128x24xf32>
    %c0_1 = arith.constant 0 : index
    %c0_2 = arith.constant 0 : index
    %1 = vector.load %arg4[%c0_1, %c0_2] : memref<24x8xf32, #tpu.memory_space<vmem>>, vector<24x8xf32>
    %2 = vector.extract_strided_slice %1 {offsets = [0, 0], sizes = [10, 1], strides = [1, 1]} : vector<24x8xf32> to vector<10x1xf32>
    %3 = vector.extract_strided_slice %1 {offsets = [0, 1], sizes = [10, 1], strides = [1, 1]} : vector<24x8xf32> to vector<10x1xf32>
    %4 = vector.extract_strided_slice %1 {offsets = [0, 2], sizes = [10, 1], strides = [1, 1]} : vector<24x8xf32> to vector<10x1xf32>
    %5 = vector.extract_strided_slice %1 {offsets = [0, 3], sizes = [10, 1], strides = [1, 1]} : vector<24x8xf32> to vector<10x1xf32>
    %6 = vector.extract_strided_slice %1 {offsets = [0, 4], sizes = [10, 1], strides = [1, 1]} : vector<24x8xf32> to vector<10x1xf32>
    %7 = vector.extract_strided_slice %1 {offsets = [0, 5], sizes = [10, 1], strides = [1, 1]} : vector<24x8xf32> to vector<10x1xf32>
    %8 = vector.extract_strided_slice %1 {offsets = [0, 6], sizes = [24, 1], strides = [1, 1]} : vector<24x8xf32> to vector<24x1xf32>
    %c0_3 = arith.constant 0 : index
    %c0_4 = arith.constant 0 : index
    %9 = vector.load %arg1[%c0_3, %c0_4] : memref<10x24xf32, #tpu.memory_space<vmem>>, vector<10x24xf32>
    %cst = arith.constant dense<0.000000e+00> : vector<10x128xf32>
    %10 = tpu.matmul %9, %0, %cst {dimension_numbers = #tpu.dot_dimension_numbers<[1], [1], [0], [0], [0, 0, 1, 0], [], []>, precision = #tpu.contract_precision<fp32>} : vector<10x24xf32>, vector<128x24xf32>, vector<10x128xf32> -> vector<10x128xf32>
    %11 = vector.broadcast %2 : vector<10x1xf32> to vector<10x128xf32>
    %12 = arith.addf %10, %11 : vector<10x128xf32>
    %cst_5 = arith.constant dense<0.000000e+00> : vector<128xf32>
    %13 = vector.multi_reduction <add>, %12, %cst_5 [0] : vector<10x128xf32> to vector<128xf32>
    %14 = vector.shape_cast %13 : vector<128xf32> to vector<1x128xf32>
    %cst_6 = arith.constant 1.000000e+01 : f32
    %15 = vector.broadcast %cst_6 : f32 to vector<1x128xf32>
    %16 = arith.divf %14, %15 : vector<1x128xf32>
    %17 = vector.broadcast %16 : vector<1x128xf32> to vector<10x128xf32>
    %18 = arith.subf %12, %17 : vector<10x128xf32>
    %19 = arith.mulf %18, %18 : vector<10x128xf32>
    %cst_7 = arith.constant dense<0.000000e+00> : vector<128xf32>
    %20 = vector.multi_reduction <add>, %19, %cst_7 [0] : vector<10x128xf32> to vector<128xf32>
    %21 = vector.shape_cast %20 : vector<128xf32> to vector<1x128xf32>
    %cst_8 = arith.constant 9.000000e+00 : f32
    %22 = vector.broadcast %cst_8 : f32 to vector<1x128xf32>
    %23 = arith.divf %21, %22 : vector<1x128xf32>
    %24 = math.sqrt %23 : vector<1x128xf32>
    %cst_9 = arith.constant 9.99999997E-7 : f32
    %25 = vector.broadcast %cst_9 : f32 to vector<1x128xf32>
    %26 = arith.addf %24, %25 : vector<1x128xf32>
    %27 = tpu.reciprocal %26 : vector<1x128xf32> -> vector<1x128xf32>
    %28 = vector.broadcast %16 : vector<1x128xf32> to vector<10x128xf32>
    %29 = arith.subf %12, %28 : vector<10x128xf32>
    %30 = vector.broadcast %27 : vector<1x128xf32> to vector<10x128xf32>
    %31 = arith.mulf %29, %30 : vector<10x128xf32>
    %32 = vector.broadcast %3 : vector<10x1xf32> to vector<10x128xf32>
    %33 = arith.mulf %31, %32 : vector<10x128xf32>
    %34 = vector.broadcast %4 : vector<10x1xf32> to vector<10x128xf32>
    %35 = arith.addf %33, %34 : vector<10x128xf32>
    %36 = arith.addf %12, %35 : vector<10x128xf32>
    %cst_10 = arith.constant 0.000000e+00 : f32
    %37 = vector.broadcast %cst_10 : f32 to vector<10x128xf32>
    %38 = arith.maximumf %36, %37 : vector<10x128xf32>
    %c0_11 = arith.constant 0 : index
    %c0_12 = arith.constant 0 : index
    %39 = vector.load %arg2[%c0_11, %c0_12] : memref<10x10xf32, #tpu.memory_space<vmem>>, vector<10x10xf32>
    %cst_13 = arith.constant dense<0.000000e+00> : vector<10x128xf32>
    %40 = tpu.matmul %39, %38, %cst_13 {dimension_numbers = #tpu.dot_dimension_numbers<[1], [0], [0], [1], [0, 0, 1, 1], [], []>, precision = #tpu.contract_precision<fp32>} : vector<10x10xf32>, vector<10x128xf32>, vector<10x128xf32> -> vector<10x128xf32>
    %41 = vector.broadcast %5 : vector<10x1xf32> to vector<10x128xf32>
    %42 = arith.addf %40, %41 : vector<10x128xf32>
    %cst_14 = arith.constant dense<0.000000e+00> : vector<128xf32>
    %43 = vector.multi_reduction <add>, %42, %cst_14 [0] : vector<10x128xf32> to vector<128xf32>
    %44 = vector.shape_cast %43 : vector<128xf32> to vector<1x128xf32>
    %cst_15 = arith.constant 1.000000e+01 : f32
    %45 = vector.broadcast %cst_15 : f32 to vector<1x128xf32>
    %46 = arith.divf %44, %45 : vector<1x128xf32>
    %47 = vector.broadcast %46 : vector<1x128xf32> to vector<10x128xf32>
    %48 = arith.subf %42, %47 : vector<10x128xf32>
    %49 = arith.mulf %48, %48 : vector<10x128xf32>
    %cst_16 = arith.constant dense<0.000000e+00> : vector<128xf32>
    %50 = vector.multi_reduction <add>, %49, %cst_16 [0] : vector<10x128xf32> to vector<128xf32>
    %51 = vector.shape_cast %50 : vector<128xf32> to vector<1x128xf32>
    %cst_17 = arith.constant 9.000000e+00 : f32
    %52 = vector.broadcast %cst_17 : f32 to vector<1x128xf32>
    %53 = arith.divf %51, %52 : vector<1x128xf32>
    %54 = math.sqrt %53 : vector<1x128xf32>
    %cst_18 = arith.constant 9.99999997E-7 : f32
    %55 = vector.broadcast %cst_18 : f32 to vector<1x128xf32>
    %56 = arith.addf %54, %55 : vector<1x128xf32>
    %57 = tpu.reciprocal %56 : vector<1x128xf32> -> vector<1x128xf32>
    %58 = vector.broadcast %46 : vector<1x128xf32> to vector<10x128xf32>
    %59 = arith.subf %42, %58 : vector<10x128xf32>
    %60 = vector.broadcast %57 : vector<1x128xf32> to vector<10x128xf32>
    %61 = arith.mulf %59, %60 : vector<10x128xf32>
    %62 = vector.broadcast %6 : vector<10x1xf32> to vector<10x128xf32>
    %63 = arith.mulf %61, %62 : vector<10x128xf32>
    %64 = vector.broadcast %7 : vector<10x1xf32> to vector<10x128xf32>
    %65 = arith.addf %63, %64 : vector<10x128xf32>
    %66 = arith.addf %42, %65 : vector<10x128xf32>
    %cst_19 = arith.constant 0.000000e+00 : f32
    %67 = vector.broadcast %cst_19 : f32 to vector<10x128xf32>
    %68 = arith.maximumf %66, %67 : vector<10x128xf32>
    %c0_20 = arith.constant 0 : index
    %c0_21 = arith.constant 0 : index
    %69 = vector.load %arg3[%c0_20, %c0_21] : memref<24x10xf32, #tpu.memory_space<vmem>>, vector<24x10xf32>
    %cst_22 = arith.constant dense<0.000000e+00> : vector<24x128xf32>
    %70 = tpu.matmul %69, %68, %cst_22 {dimension_numbers = #tpu.dot_dimension_numbers<[1], [0], [0], [1], [0, 0, 1, 1], [], []>, precision = #tpu.contract_precision<fp32>} : vector<24x10xf32>, vector<10x128xf32>, vector<24x128xf32> -> vector<24x128xf32>
    %71 = vector.broadcast %8 : vector<24x1xf32> to vector<24x128xf32>
    %72 = arith.addf %70, %71 : vector<24x128xf32>
    %73 = tpu.transpose %72, [1, 0] : vector<24x128xf32> -> vector<128x24xf32>
    %c0_23 = arith.constant 0 : index
    %c0_24 = arith.constant 0 : index
    %74 = vector.load %arg6[%c0_23, %c0_24] : memref<128x24xf32, #tpu.memory_space<vmem>>, vector<128x24xf32>
    tpu.vector_store %arg6[%c0_23, %c0_24], %73 {strides = array<i32>} : memref<128x24xf32, #tpu.memory_space<vmem>>, vector<128x24xf32>,
    return
  }
  func.func @transform_0(%arg0: i32) -> (i32, i32) {
    %c0_i32 = arith.constant 0 : i32
    %c0_i32_0 = arith.constant 0 : i32
    %c0_i32_1 = arith.constant 0 : i32
    return %c0_i32, %c0_i32_0 : i32, i32
  }
  func.func @transform_1(%arg0: i32) -> (i32, i32) {
    %c0_i32 = arith.constant 0 : i32
    %c0_i32_0 = arith.constant 0 : i32
    %c0_i32_1 = arith.constant 0 : i32
    return %c0_i32, %c0_i32_0 : i32, i32
  }
  func.func @transform_2(%arg0: i32) -> (i32, i32) {
    %c0_i32 = arith.constant 0 : i32
    %c0_i32_0 = arith.constant 0 : i32
    %c0_i32_1 = arith.constant 0 : i32
    return %c0_i32, %c0_i32_0 : i32, i32
  }
  func.func @transform_3(%arg0: i32) -> (i32, i32) {
    %c0_i32 = arith.constant 0 : i32
    %c0_i32_0 = arith.constant 0 : i32
    %c0_i32_1 = arith.constant 0 : i32
    return %c0_i32, %c0_i32_0 : i32, i32
  }
  func.func @transform_4(%arg0: i32) -> (i32, i32) {
    %c0_i32 = arith.constant 0 : i32
    %c0_i32_0 = arith.constant 0 : i32
    return %arg0, %c0_i32 : i32, i32
  }
  func.func @transform_5(%arg0: i32) -> (i32, i32) {
    %c0_i32 = arith.constant 0 : i32
    %c0_i32_0 = arith.constant 0 : i32
    return %arg0, %c0_i32 : i32, i32
  }
}

</mosaic_0001>

<bundles_post_ra>
// kernel: feedforward.1
= control target key start
LH: loop header
LB: loop body
LE: loop exit
PB: predicated region body
PF: predicated region fallthrough
CT: control target
= control target key end

     0   :  { %vm51_vm0 = vcmask 195584   ;;  %vm478_vm1 = vcmask 1041408   ;;  %vm578_vm6 = vcmask 80896   ;;  %s1709_s4 = inlined_call_operand.vmem [shape: f32[128,24], index: 4, kind: input, shape index: {}]   ;;  %s1710_s0 = inlined_call_operand.vmem [shape: f32[10,24], index: 0, kind: input, shape index: {}]   ;;  %s1711_s3 = inlined_call_operand.vmem [shape: f32[24,8], index: 3, kind: input, shape index: {}]   ;;  %s1712_s1 = inlined_call_operand.vmem [shape: f32[10,10], index: 1, kind: input, shape index: {}]   ;;  %s1713_s2 = inlined_call_operand.vmem [shape: f32[24,10], index: 2, kind: input, shape index: {}]   ;;  %s1714_s5 = inlined_call_operand.vmem [shape: f32[128,24], index: 5, kind: output, shape index: {}]  }
   0x1   :  { %v35_v0 = vld [vmem:[%s1709_s4 + $0x78] sm:$0xff]  ;;  %v34_v1 = vld [vmem:[%s1709_s4 + $0x70] sm:$0xff]  ;;  %v33_v2 = vld [vmem:[%s1709_s4 + $0x68] sm:$0xff] }
   0x2   :  { %v104_v3 = vsel %vm51_vm0, %v35_v0, 0  ;;  %v101_v4 = vsel %vm51_vm0, %v34_v1, 0  ;;  %v98_v5 = vsel %vm51_vm0, %v33_v2, 0  ;;  %v32_v6 = vld [vmem:[%s1709_s4 + $0x60] sm:$0xff]  ;;  %v31_v7 = vld [vmem:[%s1709_s4 + $0x58] sm:$0xff]  ;;  %v30_v17 = vld [vmem:[%s1709_s4 + $0x50] sm:$0xff] }
   0x3   :  { %v1246_v8 = vand.u32 4294901760, %v104_v3  ;;  %v1248_v9 = vand.u32 4294901760, %v101_v4  ;;  %v1250_v10 = vand.u32 4294901760, %v98_v5  ;;  %v95_v11 = vsel %vm51_vm0, %v32_v6, 0  ;;  %v29_v26 = vld [vmem:[%s1709_s4 + $0x48] sm:$0xff]  ;;  %v28_v34 = vld [vmem:[%s1709_s4 + $0x40] sm:$0xff] }
   0x4   :  { %v1253_v12 = vand.u32 4294901760, %v95_v11  ;;  %v92_v15 = vsel %vm51_vm0, %v31_v7, 0  ;;  %v89_v21 = vsel %vm51_vm0, %v30_v17, 0  ;;  %v86_v29 = vsel %vm51_vm0, %v29_v26, 0  ;;  %v27_v41 = vld [vmem:[%s1709_s4 + $0x38] sm:$0xff]  ;;  %v26_v48 = vld [vmem:[%s1709_s4 + $0x30] sm:$0xff] }
   0x5   :  { %107 = vmatpush.xpose.msra.mxu0 %v1246_v8  ;;  %v1257_v13 = vsub.f32 %v104_v3, %v1246_v8  ;;  %v1260_v14 = vsub.f32 %v101_v4, %v1248_v9  ;;  %v1264_v16 = vsub.f32 %v98_v5, %v1250_v10  ;;  %320 = vmatpush.xpose.msra.mxu3 %v1246_v8  ;;  %v1273_v20 = vand.u32 4294901760, %v92_v15  ;;  %v25_v55 = vld [vmem:[%s1709_s4 + $0x28] sm:$0xff]  ;;  %v24_v62 = vld [vmem:[%s1709_s4 + $0x20] sm:$0xff]  ;;  %v23_v5 = vld [vmem:[%s1709_s4 + $0x18] sm:$0xff] }
   0x6   :  { %v1285_v25 = vsub.f32 %v95_v11, %v1253_v12  ;;  %v1292_v28 = vand.u32 4294901760, %v89_v21  ;;  %v1308_v35 = vand.u32 4294901760, %v86_v29  ;;  %v83_v40 = vsel %vm51_vm0, %v28_v34, 0  ;;  %v21_v34 = vld [vmem:[%s1709_s4 + $0x8] sm:$0xff] }
   0x7   :  { %v157_v18 = vand.u32 4294901760, %v1257_v13  ;;  %v163_v19 = vand.u32 4294901760, %v1260_v14  ;;  %262 = vmatpush.xpose.msra.mxu2 %v1257_v13  ;;  %v169_v24 = vand.u32 4294901760, %v1264_v16  ;;  %v1301_v33 = vsub.f32 %v92_v15, %v1273_v20 }
   0x8   :  { %v175_v32 = vand.u32 4294901760, %v1285_v25  ;;  %v1311_v36 = vsub.f32 %v89_v21, %v1292_v28  ;;  %v1324_v42 = vand.u32 4294901760, %v83_v40  ;;  %v80_v46 = vsel %vm51_vm0, %v27_v41, 0 }
   0x9   :  { %109 = vmatpush.xpose.msra.mxu0 %v1248_v9  ;;  %v158_v22 = vsub.f32 %v1257_v13, %v157_v18  ;;  %v164_v23 = vsub.f32 %v1260_v14, %v163_v19  ;;  %322 = vmatpush.xpose.msra.mxu3 %v1248_v9  ;;  %v170_v31 = vsub.f32 %v1264_v16, %v169_v24  ;;  %v181_v39 = vand.u32 4294901760, %v1301_v33 }
   0xa   :  { %v176_v38 = vsub.f32 %v1285_v25, %v175_v32  ;;  %v187_v43 = vand.u32 4294901760, %v1311_v36  ;;  %v1333_v47 = vsub.f32 %v86_v29, %v1308_v35  ;;  %v1343_v50 = vand.u32 4294901760, %v80_v46 }
   0xb   :  { %v159_v27 = vand.u32 4294901760, %v158_v22  ;;  %265 = vmatpush.xpose.msra.mxu2 %v1260_v14  ;;  %v165_v30 = vand.u32 4294901760, %v164_v23  ;;  %v171_v37 = vand.u32 4294901760, %v170_v31  ;;  %v182_v45 = vsub.f32 %v1301_v33, %v181_v39  ;;  %v22_v22 = vld [vmem:[%s1709_s4 + $0x10] sm:$0xff]  ;;  %v40_v14 = vld [vmem:[%s1710_s0 + $0x8] sm:$0x3] }
   0xc   :  { %v177_v44 = vand.u32 4294901760, %v176_v38  ;;  %v188_v49 = vsub.f32 %v1311_v36, %v187_v43  ;;  %v193_v52 = vand.u32 4294901760, %v1333_v47  ;;  %v77_v53 = vsel %vm51_vm0, %v26_v48, 0 }
   0xd   :  { %111 = vmatpush.xpose.msra.mxu0 %v1250_v10  ;;  %160 = vmatpush.xpose.msra.mxu1 %v159_v27  ;;  %v183_v51 = vand.u32 4294901760, %v182_v45  ;;  %v1349_v54 = vsub.f32 %v83_v40, %v1324_v42  ;;  %v1356_v56 = vand.u32 4294901760, %v77_v53  ;;  %v74_v57 = vsel %vm51_vm0, %v25_v55, 0 }
   0xe   :  { %324 = vmatpush.xpose.msra.mxu3 %v1250_v10  ;;  %v189_v58 = vand.u32 4294901760, %v188_v49  ;;  %v194_v59 = vsub.f32 %v1333_v47, %v193_v52  ;;  %v1365_v61 = vsub.f32 %v80_v46, %v1343_v50  ;;  %v1372_v63 = vand.u32 4294901760, %v74_v57  ;;  %v20_v46 = vld [vmem:[%s1709_s4] sm:$0xff] }
   0xf   :  { %268 = vmatpush.xpose.msra.mxu2 %v1264_v16  ;;  %v199_v60 = vand.u32 4294901760, %v1349_v54  ;;  %v71_v0 = vsel %vm51_vm0, %v24_v62, 0  ;;  %v1381_v4 = vsub.f32 %v77_v53, %v1356_v56  ;;  %v68_v21 = vsel %vm51_vm0, %v23_v5, 0 }
  0x10   :  { %v195_v1 = vand.u32 4294901760, %v194_v59  ;;  %v205_v3 = vand.u32 4294901760, %v1365_v61  ;;  %v1388_v6 = vand.u32 4294901760, %v71_v0  ;;  %v1396_v17 = vsub.f32 %v74_v57, %v1372_v63 }
  0x11   :  { %113 = vmatpush.xpose.msra.mxu0 %v1253_v12  ;;  %166 = vmatpush.xpose.msra.mxu1 %v165_v30  ;;  %v200_v2 = vsub.f32 %v1349_v54, %v199_v60  ;;  %v211_v15 = vand.u32 4294901760, %v1381_v4  ;;  %v1411_v29 = vand.u32 4294901760, %v68_v21  ;;  %v65_v31 = vsel %vm51_vm0, %v22_v22, 0 }
  0x12   :  { %326 = vmatpush.xpose.msra.mxu3 %v1253_v12  ;;  %v206_v11 = vsub.f32 %v1365_v61, %v205_v3  ;;  %v1405_v23 = vsub.f32 %v71_v0, %v1388_v6  ;;  %v217_v30 = vand.u32 4294901760, %v1396_v17  ;;  %v1425_v41 = vand.u32 4294901760, %v65_v31 }
  0x13   :  { %271 = vmatpush.xpose.msra.mxu2 %v1285_v25  ;;  %v201_v7 = vand.u32 4294901760, %v200_v2  ;;  %v212_v27 = vsub.f32 %v1381_v4, %v211_v15  ;;  %v62_v45 = vsel %vm51_vm0, %v21_v34, 0  ;;  %v59_v57 = vsel %vm51_vm0, %v20_v46, 0 }
  0x14   :  { %v207_v26 = vand.u32 4294901760, %v206_v11  ;;  %v218_v40 = vsub.f32 %v1396_v17, %v217_v30  ;;  %v1444_v55 = vsub.f32 %v65_v31, %v1425_v41  ;;  %v1453_v62 = vand.u32 4294901760, %v59_v57 }
  0x15   :  { %115 = vmatpush.xpose.msra.mxu0 %v1273_v20  ;;  %172 = vmatpush.xpose.msra.mxu1 %v171_v37  ;;  %v223_v37 = vand.u32 4294901760, %v1405_v23  ;;  %v213_v38 = vand.u32 4294901760, %v212_v27  ;;  %v56_v16 = vsel %vm51_vm0, %v40_v14, 0 }
  0x16   :  { %328 = vmatpush.xpose.msra.mxu3 %v1273_v20  ;;  %v219_v49 = vand.u32 4294901760, %v218_v40  ;;  %v235_v0 = vand.u32 4294901760, %v1444_v55  ;;  %v1467_v11 = vsub.f32 %v59_v57, %v1453_v62 }
  0x17   :  { %274 = vmatpush.xpose.msra.mxu2 %v1301_v33  ;;  %v224_v48 = vsub.f32 %v1405_v23, %v223_v37 }
  0x18   :  { %v236_v5 = vsub.f32 %v1444_v55, %v235_v0 }
  0x19   :  { %117 = vmatpush.xpose.msra.mxu0 %v1292_v28  ;;  %178 = vmatpush.xpose.msra.mxu1 %v177_v44  ;;  %v1428_v44 = vsub.f32 %v68_v21, %v1411_v29 }
  0x1a   :  { %330 = vmatpush.xpose.msra.mxu3 %v1292_v28  ;;  %v237_v21 = vand.u32 4294901760, %v236_v5 }
  0x1b   :  { %277 = vmatpush.xpose.msra.mxu2 %v1311_v36  ;;  %v229_v53 = vand.u32 4294901760, %v1428_v44 }
  0x1d   :  { %119 = vmatpush.xpose.msra.mxu0 %v1308_v35  ;;  %184 = vmatpush.xpose.msra.mxu1 %v183_v51  ;;  %v1440_v51 = vand.u32 4294901760, %v62_v45  ;;  %v230_v59 = vsub.f32 %v1428_v44, %v229_v53 }
  0x1e   :  { %332 = vmatpush.xpose.msra.mxu3 %v1308_v35 }
  0x1f   :  { %280 = vmatpush.xpose.msra.mxu2 %v1333_v47  ;;  %v231_v2 = vand.u32 4294901760, %v230_v59 }
  0x21   :  { %121 = vmatpush.xpose.msra.mxu0 %v1324_v42  ;;  %190 = vmatpush.xpose.msra.mxu1 %v189_v58  ;;  %v225_v58 = vand.u32 4294901760, %v224_v48 }
  0x22   :  { %334 = vmatpush.xpose.msra.mxu3 %v1324_v42 }
  0x23   :  { %283 = vmatpush.xpose.msra.mxu2 %v1349_v54 }
  0x25   :  { %123 = vmatpush.xpose.msra.mxu0 %v1343_v50  ;;  %196 = vmatpush.xpose.msra.mxu1 %v195_v1  ;;  %v1457_v1 = vsub.f32 %v62_v45, %v1440_v51 }
  0x26   :  { %336 = vmatpush.xpose.msra.mxu3 %v1343_v50 }
  0x27   :  { %286 = vmatpush.xpose.msra.mxu2 %v1365_v61 }
  0x29   :  { %125 = vmatpush.xpose.msra.mxu0 %v1356_v56  ;;  %202 = vmatpush.xpose.msra.mxu1 %v201_v7  ;;  %v241_v7 = vand.u32 4294901760, %v1457_v1 }
  0x2a   :  { %338 = vmatpush.xpose.msra.mxu3 %v1356_v56 }
  0x2b   :  { %289 = vmatpush.xpose.msra.mxu2 %v1381_v4  ;;  %v242_v22 = vsub.f32 %v1457_v1, %v241_v7 }
  0x2d   :  { %127 = vmatpush.xpose.msra.mxu0 %v1372_v63  ;;  %208 = vmatpush.xpose.msra.mxu1 %v207_v26  ;;  %v247_v26 = vand.u32 4294901760, %v1467_v11  ;;  %v243_v27 = vand.u32 4294901760, %v242_v22 }
  0x2e   :  { %340 = vmatpush.xpose.msra.mxu3 %v1372_v63 }
  0x2f   :  { %292 = vmatpush.xpose.msra.mxu2 %v1396_v17  ;;  %v248_v31 = vsub.f32 %v1467_v11, %v247_v26 }
  0x31   :  { %129 = vmatpush.xpose.msra.mxu0 %v1388_v6  ;;  %214 = vmatpush.xpose.msra.mxu1 %v213_v38  ;;  %v249_v34 = vand.u32 4294901760, %v248_v31  ;;  %v39_v38 = vld [vmem:[%s1710_s0] sm:$0xff] }
  0x32   :  { %342 = vmatpush.xpose.msra.mxu3 %v1388_v6  ;;  %v53_v40 = vsel %vm51_vm0, %v39_v38, 0 }
  0x33   :  { %295 = vmatpush.xpose.msra.mxu2 %v1405_v23  ;;  %v1492_v45 = vand.u32 4294901760, %v53_v40 }
  0x35   :  { %131 = vmatpush.xpose.msra.mxu0 %v1411_v29  ;;  %220 = vmatpush.xpose.msra.mxu1 %v219_v49  ;;  %v139_v13 = vsub.f32 %v53_v40, %v1492_v45 }
  0x36   :  { %344 = vmatpush.xpose.msra.mxu3 %v1411_v29 }
  0x37   :  { %298 = vmatpush.xpose.msra.mxu2 %v1428_v44 }
  0x39   :  { %133 = vmatpush.xpose.msra.mxu0 %v1425_v41  ;;  %226 = vmatpush.xpose.msra.mxu1 %v225_v58 }
  0x3a   :  { %346 = vmatpush.xpose.msra.mxu3 %v1425_v41 }
  0x3b   :  { %301 = vmatpush.xpose.msra.mxu2 %v1444_v55 }
  0x3d   :  { %135 = vmatpush.xpose.msra.mxu0 %v1440_v51  ;;  %232 = vmatpush.xpose.msra.mxu1 %v231_v2 }
  0x3e   :  { %348 = vmatpush.xpose.msra.mxu3 %v1440_v51 }
  0x3f   :  { %304 = vmatpush.xpose.msra.mxu2 %v1457_v1 }
  0x41   :  { %137 = vmatpush.xpose.msra.mxu0 %v1453_v62  ;;  %238 = vmatpush.xpose.msra.mxu1 %v237_v21 }
  0x42   :  { %350 = vmatpush.xpose.msra.mxu3 %v1453_v62 }
  0x43   :  { %307 = vmatpush.xpose.msra.mxu2 %v1467_v11 }
  0x45   :  { %367 = vmatpush.xpose.msrb.mxu0 %v157_v18  ;;  %244 = vmatpush.xpose.msra.mxu1 %v243_v27  ;;  %v140_v18 = vand.u32 4294901760, %v139_v13 }
  0x46   :  { %310 = vmatmul.f32.vlgmr.msra.gmra.mxu2 %v139_v13 }
  0x47   :  { %v141_v46 = vsub.f32 %v139_v13, %v140_v18  ;;  %354 = vmatmul.f32.vlgmr.msra.gmra.mxu3 %v140_v18 }
  0x49   :  { %371 = vmatpush.xpose.msrb.mxu0 %v163_v19  ;;  %250 = vmatpush.xpose.msra.mxu1 %v249_v34  ;;  %v142_v19 = vand.u32 4294901760, %v141_v46 }
  0x4b   :  { %143 = vmatmul.f32.vlgmr.msra.gmra.mxu0 %v142_v19 }
  0x4c   :  { %252 = vmatmul.f32.vlgmr.msra.gmra.mxu1 %v1492_v45 }
  0x4d   :  { %375 = vmatpush.xpose.msrb.mxu0 %v169_v24  ;;  %438 = vmatpush.xpose.msrb.mxu1 %v1246_v8  ;;  %v146_v24 = vand.u32 4294901760, %v56_v16 }
  0x4f   :  { %v147_v8 = vsub.f32 %v56_v16, %v146_v24 }
  0x51   :  { %379 = vmatpush.xpose.msrb.mxu0 %v175_v32  ;;  %440 = vmatpush.xpose.msrb.mxu1 %v1248_v9  ;;  %v148_v48 = vand.u32 4294901760, %v147_v8  ;;  %v1189_v9 = vmov 0   ;;  %v1515_v32 = vld [vmem:[%s1711_s3 + $0x8] sm:$0xff] }
  0x52   :  { %315 = vmatmul.f32.gmra.mxu2 %v147_v8  ;;  %1164 = vset.pattern.permute.xlu0 %v1189_v9 }
  0x53   :  { %v149_v49 = vsub.f32 %v147_v8, %v148_v48  ;;  %360 = vmatmul.f32.gmra.mxu3 %v148_v48  ;;  %48 = vperm.xlu0 %1164, %v1515_v32  }
  0x54   :  { %256 = vmatmul.f32.gmra.mxu1 %v146_v24 }
  0x55   :  { %383 = vmatpush.xpose.msrb.mxu0 %v181_v39  ;;  %442 = vmatpush.xpose.msrb.mxu1 %v1250_v10  ;;  %v150_v25 = vand.u32 4294901760, %v149_v49  ;;  %v1527_v10 = vld [vmem:[%s1711_s3] sm:$0xff] }
  0x57   :  { %151 = vmatmul.f32.gmra.mxu0 %v150_v25 }
  0x59   :  { %387 = vmatpush.xpose.msrb.mxu0 %v187_v43  ;;  %444 = vmatpush.xpose.msrb.mxu1 %v1253_v12  ;;  %v1190_v12 = vmov 1  }
  0x5a   :  { %1165 = vset.pattern.permute.xlu1 %v1190_v12  ;;  %1167 = vset.pattern.permute.xlu2 %v1190_v12 }
  0x5b   :  { %43 = vperm.xlu0 %1164, %v1527_v10   ;;  %549 = vperm.xlu1 %1165, %v1515_v32  }
  0x5c   :  { %545 = vperm.xlu2 %1167, %v1527_v10  }
  0x5d   :  { %391 = vmatpush.xpose.msrb.mxu0 %v193_v52  ;;  %446 = vmatpush.xpose.msrb.mxu1 %v1273_v20  ;;  %v1191_v20 = vmov 2  }
  0x61   :  { %395 = vmatpush.xpose.msrb.mxu0 %v199_v60  ;;  %448 = vmatpush.xpose.msrb.mxu1 %v1292_v28 }
  0x63   :  { %1166 = vset.pattern.permute.xlu1 %v1191_v20 }
  0x64   :  { %1168 = vset.pattern.permute.xlu2 %v1191_v20  ;;  %559 = vperm.xlu1 %1166, %v1515_v32  }
  0x65   :  { %399 = vmatpush.xpose.msrb.mxu0 %v205_v3  ;;  %450 = vmatpush.xpose.msrb.mxu1 %v1308_v35 }
  0x66   :  { %555 = vperm.xlu2 %1168, %v1527_v10  }
  0x69   :  { %403 = vmatpush.xpose.msrb.mxu0 %v211_v15  ;;  %452 = vmatpush.xpose.msrb.mxu1 %v1324_v42 }
  0x6d   :  { %407 = vmatpush.xpose.msrb.mxu0 %v217_v30  ;;  %454 = vmatpush.xpose.msrb.mxu1 %v1343_v50 }
  0x71   :  { %411 = vmatpush.xpose.msrb.mxu0 %v223_v37  ;;  %456 = vmatpush.xpose.msrb.mxu1 %v1356_v56 }
  0x75   :  { %415 = vmatpush.xpose.msrb.mxu0 %v229_v53  ;;  %458 = vmatpush.xpose.msrb.mxu1 %v1372_v63  ;;  %v1192_v63 = vmov 10.0  }
  0x76   :  { %1177 = vrcp.f32 %v1192_v63 }
  0x79   :  { %419 = vmatpush.xpose.msrb.mxu0 %v235_v0  ;;  %460 = vmatpush.xpose.msrb.mxu1 %v1388_v6 }
  0x7c   :  { %v1178_v17 = vpop.eup %1177 }
  0x7d   :  { %423 = vmatpush.xpose.msrb.mxu0 %v241_v7  ;;  %462 = vmatpush.xpose.msrb.mxu1 %v1411_v29  ;;  %v1193_v7 = vmov 9.0   ;;  %vm492_vm2 = vweird.f32 %v1178_v17 }
  0x7e   :  { %1179 = vrcp.f32 %v1193_v7 }
  0x81   :  { %427 = vmatpush.xpose.msrb.mxu0 %v247_v26  ;;  %464 = vmatpush.xpose.msrb.mxu1 %v1425_v41  ;;  %v488_v41 = vmul.f32 10.0, %v1178_v17 }
  0x83   :  { %v489_v58 = vsub.f32 1.0, %v488_v41 }
  0x84   :  { %429 = vmatmul.f32.vlgmr.msrb.gmra.mxu0 %v1492_v45  ;;  %v1180_v27 = vpop.eup %1179 }
  0x85   :  { %466 = vmatpush.xpose.msrb.mxu1 %v1440_v51  ;;  %v490_v0 = vmul.f32 %v1178_v17, %v489_v58  ;;  %v508_v34 = vmul.f32 9.0, %v1180_v27  ;;  %vm512_vm3 = vweird.f32 %v1180_v27 }
  0x87   :  { %v491_v5 = vadd.f32 %v1178_v17, %v490_v0  ;;  %v509_v18 = vsub.f32 1.0, %v508_v34 }
  0x89   :  { %468 = vmatpush.xpose.msrb.mxu1 %v1453_v62  ;;  %v1569_v22 = vsel %vm492_vm2, %v1178_v17, %v491_v5  ;;  %v510_v19 = vmul.f32 %v1180_v27, %v509_v18 }
  0x8b   :  { %v511_v48 = vadd.f32 %v1180_v27, %v510_v19 }
  0x8c   :  { %433 = vmatmul.f32.gmra.mxu0 %v146_v24  ;;  %470 = vmatmul.f32.vlgmr.msrb.gmra.mxu1 %v1492_v45 }
  0x8d   :  { %v1575_v25 = vsel %vm512_vm3, %v1180_v27, %v511_v48 }
  0x94   :  { %474 = vmatmul.f32.gmra.mxu1 %v146_v24 }
  0xc5   :  { %v49_v35 = vpop.permute.xlu0 %48 }
  0xc8   :  { %v144_v28 = vpop.f32.mrf.mxu0 }
  0xc9   :  { %v253_v33 = vpop.f32.mrf.mxu1  ;;  %v311_v39 = vpop.f32.mrf.mxu2 }
  0xca   :  { %v355_v47 = vpop.f32.mrf.mxu3 }
  0xcd   :  { %v44_v43 = vpop.permute.xlu0 %43  ;;  %v550_v63 = vpop.permute.xlu1 %549 }
  0xce   :  { %v145_v52 = vadd.f32 %v144_v28, %v44_v43 }
  0xd0   :  { %v254_v60 = vadd.f32 %v253_v33, %v145_v52 }
  0xd1   :  { %v257_v42 = vpop.f32.mrf.mxu1 }
  0xd2   :  { %v312_v6 = vadd.f32 %v311_v39, %v254_v60 }
  0xd4   :  { %v152_v36 = vpop.f32.mrf.mxu0  ;;  %v356_v30 = vadd.f32 %v355_v47, %v312_v6 }
  0xd5   :  { %v153_v50 = vadd.f32 %v152_v36, %v49_v35  ;;  %v316_v61 = vpop.f32.mrf.mxu2 }
  0xd6   :  { %v361_v15 = vpop.f32.mrf.mxu3 }
  0xd7   :  { %v258_v56 = vadd.f32 %v257_v42, %v153_v50 }
  0xd9   :  { %v317_v4 = vadd.f32 %v316_v61, %v258_v56  ;;  %v568_v61 = vld [vmem:[%s1712_s1] sm:$0xff] }
  0xdb   :  { %v362_v29 = vadd.f32 %v361_v15, %v317_v4  ;;  %v580_v15 = vsel %vm578_vm6, %v568_v61, 0 }
 0x101   :  { %v430_v54 = vpop.f32.mrf.mxu0 }
 0x102   :  { %v431_v44 = vadd.f32 %v430_v54, %v356_v30  ;;  %v1582_v30 = vand.u32 4294901760, %v580_v15 }
 0x109   :  { %v471_v3 = vpop.f32.mrf.mxu1  ;;  %v434_v23 = vpop.f32.mrf.mxu0 }
 0x10a   :  { %v435_v37 = vadd.f32 %v434_v23, %v362_v29  ;;  %v1564_v55 = vadd.f32 %v471_v3, %v431_v44  ;;  %v546_v3 = vpop.permute.xlu2 %545  ;;  %v569_v44 = vld [vmem:[%s1712_s1 + $0x8] sm:$0x3] }
 0x111   :  { %v475_v51 = vpop.f32.mrf.mxu1 }
 0x112   :  { %v1562_v53 = vadd.f32 %v475_v51, %v435_v37  ;;  %v556_v0 = vpop.permute.xlu2 %555 }
 0x114   :  { %v479_v57 = vsel %vm478_vm1, %v1562_v53, 0.0 }
 0x115   :  { %v480_v59 = vadd.f32 %v479_v57, %v1564_v55 }
 0x117   :  { %v481_v62 = vrot.slane %v480_v59, 4 }
 0x119   :  { %v482_v1 = vadd.f32 %v481_v62, %v480_v59  ;;  %v607_v59 = vsub.f32 %v580_v15, %v1582_v30  ;;  %v560_v62 = vpop.permute.xlu1 %559 }
 0x11b   :  { %v483_v2 = vrot.slane %v482_v1, 2 }
 0x11d   :  { %v484_v11 = vadd.f32 %v483_v2, %v482_v1  ;;  %v583_v1 = vsel %vm578_vm6, %v569_v44, 0  ;;  %v1194_v2 = vmov 3  }
 0x11e   :  { %1170 = vset.pattern.permute.xlu1 %v1194_v2  ;;  %1169 = vset.pattern.permute.xlu0 %v1194_v2  ;;  %v614_v27 = vand.u32 4294901760, %v583_v1 }
 0x11f   :  { %v485_v21 = vrot.slane %v484_v11, 1  ;;  %571 = vperm.xlu1 %1170, %v1527_v10   ;;  %575 = vperm.xlu0 %1169, %v1515_v32  }
 0x121   :  { %v486_v26 = vadd.f32 %v485_v21, %v484_v11 }
 0x123   :  { %v494_v31 = vmul.f32 %v1569_v22, %v486_v26  ;;  %v608_v26 = vand.u32 4294901760, %v607_v59 }
 0x125   :  { %v495_v38 = vsub.f32 %v1564_v55, %v494_v31  ;;  %v496_v40 = vsub.f32 %v1562_v53, %v494_v31 }
 0x127   :  { %v497_v45 = vmul.f32 %v495_v38, %v495_v38  ;;  %v498_v13 = vmul.f32 %v496_v40, %v496_v40 }
 0x129   :  { %v499_v46 = vsel %vm478_vm1, %v498_v13, 0.0  ;;  %v615_v13 = vsub.f32 %v583_v1, %v614_v27 }
 0x12a   :  { %v500_v14 = vadd.f32 %v499_v46, %v497_v45  ;;  %v609_v45 = vsub.f32 %v607_v59, %v608_v26 }
 0x12c   :  { %v501_v16 = vrot.slane %v500_v14, 4 }
 0x12e   :  { %v502_v24 = vadd.f32 %v501_v16, %v500_v14  ;;  %v610_v16 = vand.u32 4294901760, %v609_v45 }
 0x130   :  { %v503_v8 = vrot.slane %v502_v24, 2 }
 0x132   :  { %v504_v49 = vadd.f32 %v503_v8, %v502_v24  ;;  %v616_v24 = vand.u32 4294901760, %v615_v13 }
 0x134   :  { %v505_v9 = vrot.slane %v504_v49, 1 }
 0x136   :  { %v506_v12 = vadd.f32 %v505_v9, %v504_v49 }
 0x138   :  { %v514_v20 = vmul.f32 %v1575_v25, %v506_v12 }
 0x13a   :  { %1181 = vrsqrt.f32 %v514_v20  ;;  %vm522_vm4 = vcmp.eq.f32.partialorder %v514_v20, inf  ;;  %v525_v47 = vand.u32 2147483648, %v514_v20  ;;  %vm524_vm5 = vcmp.eq.f32.partialorder %v514_v20, 0.0 }
 0x140   :  { %v1182_v28 = vpop.eup %1181 }
 0x141   :  { %v516_v33 = vmul.f32 %v1182_v28, %v514_v20 }
 0x143   :  { %v517_v35 = vmul.f32 %v1182_v28, %v516_v33  ;;  %v1195_v33 = vmov 5  }
 0x144   :  { %1172 = vset.pattern.permute.xlu1 %v1195_v33  ;;  %1173 = vset.pattern.permute.xlu0 %v1195_v33 }
 0x145   :  { %v518_v36 = vmul.f32 0.5, %v517_v35  ;;  %844 = vperm.xlu1 %1172, %v1515_v32   ;;  %840 = vperm.xlu0 %1173, %v1527_v10   ;;  %v1196_v35 = vmov 4  }
 0x146   :  { %1171 = vset.pattern.permute.xlu2 %v1196_v35 }
 0x147   :  { %v519_v39 = vsub.f32 1.5, %v518_v36  ;;  %834 = vperm.xlu2 %1171, %v1515_v32  }
 0x149   :  { %v520_v42 = vmul.f32 %v1182_v28, %v519_v39 }
 0x14b   :  { %v521_v43 = vmul.f32 %v520_v42, %v514_v20 }
 0x14d   :  { %v523_v50 = vsel %vm522_vm4, %v514_v20, %v521_v43 }
 0x14e   :  { %v526_v52 = vsel %vm524_vm5, %v525_v47, %v523_v50 }
 0x14f   :  { %v527_v54 = vadd.f32 1e-06, %v526_v52  ;;  %830 = vperm.xlu2 %1171, %v1527_v10  }
 0x151   :  { %1183 = vrcp.f32 %v527_v54  ;;  %v539_v6 = vand.u32 2147483648, %v527_v54  ;;  %v537_v23 = vand.u32 2147483647, %v527_v54  ;;  %vm533_vm8 = vweird.f32 %v527_v54 }
 0x153   :  { %v540_v37 = vor.u32 1.1754944e-38, %v539_v6  ;;  %vm538_vm10 = vcmp.eq.f32.partialorder %v537_v23, 8.507059e+37 }
 0x157   :  { %v1184_v56 = vpop.eup %1183 }
 0x158   :  { %v529_v60 = vmul.f32 %v1184_v56, %v527_v54  ;;  %vm534_vm7 = vweird.f32 %v1184_v56 }
 0x159   :  { %vm535_vm9 = vmor %vm533_vm8, %vm534_vm7 }
 0x15a   :  { %v530_v4 = vsub.f32 1.0, %v529_v60 }
 0x15c   :  { %v531_v17 = vmul.f32 %v1184_v56, %v530_v4 }
 0x15e   :  { %v532_v29 = vadd.f32 %v1184_v56, %v531_v17 }
 0x160   :  { %v536_v41 = vsel %vm535_vm9, %v1184_v56, %v532_v29 }
 0x161   :  { %v541_v51 = vsel %vm538_vm10, %v540_v37, %v536_v41 }
 0x162   :  { %v543_v57 = vmul.f32 %v541_v51, %v496_v40  ;;  %v542_v58 = vmul.f32 %v541_v51, %v495_v38 }
 0x164   :  { %v553_v5 = vmul.f32 %v550_v63, %v543_v57  ;;  %v552_v7 = vmul.f32 %v546_v3, %v542_v58 }
 0x166   :  { %v563_v11 = vadd.f32 %v560_v62, %v553_v5  ;;  %v562_v21 = vadd.f32 %v556_v0, %v552_v7 }
 0x168   :  { %v565_v31 = vadd.f32 %v563_v11, %v1562_v53  ;;  %v564_v34 = vadd.f32 %v562_v21, %v1564_v55  ;;  %v617_v53 = vsub.f32 %v615_v13, %v616_v24 }
 0x16a   :  { %v567_v38 = vmax.f32 %v565_v31, 0.0  ;;  %v566_v40 = vmax.f32 %v564_v34, 0.0  ;;  %v618_v20 = vand.u32 4294901760, %v617_v53 }
 0x16c   :  { %v586_v18 = vsel %vm478_vm1, %v567_v38, 0  ;;  %v604_v46 = vand.u32 4294901760, %v566_v40 }
 0x16d   :  { %v602_v14 = vand.u32 4294901760, %v586_v18 }
 0x16e   :  { %v644_v19 = vsub.f32 %v566_v40, %v604_v46 }
 0x16f   :  { %v638_v8 = vsub.f32 %v586_v18, %v602_v14  ;;  %603 = vmatpush.msrb.mxu2 %v602_v14 }
 0x170   :  { %v645_v48 = vand.u32 4294901760, %v644_v19 }
 0x171   :  { %605 = vmatpush.msrb.mxu2 %v604_v46  ;;  %v639_v49 = vand.u32 4294901760, %v638_v8 }
 0x172   :  { %611 = vmatmul.f32.vlgmr.msrb.gmra.mxu2 %v610_v16  ;;  %v646_v9 = vsub.f32 %v644_v19, %v645_v48 }
 0x173   :  { %674 = vmatpush.msra.mxu2 %v638_v8  ;;  %v640_v55 = vsub.f32 %v638_v8, %v639_v49 }
 0x174   :  { %v647_v28 = vand.u32 4294901760, %v646_v9 }
 0x175   :  { %677 = vmatpush.msra.mxu2 %v644_v19  ;;  %v641_v12 = vand.u32 4294901760, %v640_v55 }
 0x177   :  { %737 = vmatpush.msrb.mxu2 %v639_v49  ;;  %642 = vmatpush.msrb.mxu3 %v641_v12 }
 0x179   :  { %741 = vmatpush.msrb.mxu2 %v645_v48  ;;  %648 = vmatpush.msrb.mxu3 %v647_v28 }
 0x17a   :  { %619 = vmatmul.f32.gmra.mxu2 %v618_v20  ;;  %650 = vmatmul.f32.vlgmr.msrb.gmra.mxu3 %v1582_v30 }
 0x17b   :  { %704 = vmatpush.msra.mxu3 %v602_v14 }
 0x17d   :  { %706 = vmatpush.msra.mxu3 %v604_v46 }
 0x17f   :  { %766 = vmatpush.msrb.mxu3 %v602_v14 }
 0x181   :  { %768 = vmatpush.msrb.mxu3 %v604_v46 }
 0x182   :  { %654 = vmatmul.f32.gmra.mxu3 %v614_v27  ;;  %680 = vmatmul.f32.vlgmr.msra.gmra.mxu2 %v607_v59 }
 0x18a   :  { %685 = vmatmul.f32.gmra.mxu2 %v615_v13  ;;  %710 = vmatmul.f32.vlgmr.msra.gmra.mxu3 %v608_v26 }
 0x191   :  { %v576_v56 = vpop.permute.xlu0 %575  ;;  %v572_v61 = vpop.permute.xlu1 %571 }
 0x192   :  { %716 = vmatmul.f32.gmra.mxu3 %v616_v24  ;;  %743 = vmatmul.f32.vlgmr.msrb.gmra.mxu2 %v1582_v30 }
 0x19a   :  { %747 = vmatmul.f32.gmra.mxu2 %v614_v27  ;;  %770 = vmatmul.f32.vlgmr.msrb.gmra.mxu3 %v1582_v30 }
 0x1a1   :  { %v835_v35 = vpop.permute.xlu2 %834 }
 0x1a2   :  { %774 = vmatmul.f32.gmra.mxu3 %v614_v27 }
 0x1f5   :  { %v612_v36 = vpop.f32.mrf.mxu2 }
 0x1f6   :  { %v613_v3 = vadd.f32 %v612_v36, %v572_v61  ;;  %v854_v61 = vld [vmem:[%s1713_s2 + $0x8] sm:$0xff] }
 0x1fd   :  { %v620_v39 = vpop.f32.mrf.mxu2  ;;  %v651_v42 = vpop.f32.mrf.mxu3 }
 0x1fe   :  { %v621_v63 = vadd.f32 %v620_v39, %v576_v56  ;;  %v652_v15 = vadd.f32 %v651_v42, %v613_v3 }
 0x205   :  { %v655_v43 = vpop.f32.mrf.mxu3  ;;  %v681_v47 = vpop.f32.mrf.mxu2 }
 0x206   :  { %v656_v6 = vadd.f32 %v655_v43, %v621_v63  ;;  %v682_v23 = vadd.f32 %v681_v47, %v652_v15 }
 0x20d   :  { %v686_v50 = vpop.f32.mrf.mxu2  ;;  %v711_v52 = vpop.f32.mrf.mxu3 }
 0x20e   :  { %v687_v17 = vadd.f32 %v686_v50, %v656_v6  ;;  %v712_v37 = vadd.f32 %v711_v52, %v682_v23  ;;  %v841_v23 = vpop.permute.xlu0 %840 }
 0x215   :  { %v717_v54 = vpop.f32.mrf.mxu3  ;;  %v744_v60 = vpop.f32.mrf.mxu2 }
 0x216   :  { %v718_v30 = vadd.f32 %v717_v54, %v687_v17  ;;  %v745_v44 = vadd.f32 %v744_v60, %v712_v37  ;;  %v845_v17 = vpop.permute.xlu1 %844 }
 0x21d   :  { %v771_v4 = vpop.f32.mrf.mxu3  ;;  %v748_v29 = vpop.f32.mrf.mxu2 }
 0x21e   :  { %v749_v41 = vadd.f32 %v748_v29, %v718_v30  ;;  %v1603_v58 = vadd.f32 %v771_v4, %v745_v44  ;;  %v831_v4 = vpop.permute.xlu2 %830  ;;  %v873_v29 = vsel %vm578_vm6, %v854_v61, 0 }
 0x225   :  { %v775_v51 = vpop.f32.mrf.mxu3 }
 0x226   :  { %v1601_v57 = vadd.f32 %v775_v51, %v749_v41 }
 0x228   :  { %v778_v59 = vsel %vm478_vm1, %v1601_v57, 0.0 }
 0x229   :  { %v779_v62 = vadd.f32 %v778_v59, %v1603_v58  ;;  %v1624_v59 = vand.u32 4294901760, %v873_v29 }
 0x22b   :  { %v780_v0 = vrot.slane %v779_v62, 4 }
 0x22d   :  { %v781_v1 = vadd.f32 %v780_v0, %v779_v62 }
 0x22f   :  { %v782_v2 = vrot.slane %v781_v1, 2 }
 0x231   :  { %v783_v5 = vadd.f32 %v782_v2, %v781_v1  ;;  %v855_v1 = vld [vmem:[%s1713_s2 + $0x10] sm:$0xff]  ;;  %v1197_v2 = vmov 6  }
 0x232   :  { %1174 = vset.pattern.permute.xlu1 %v1197_v2  ;;  %1175 = vset.pattern.permute.xlu2 %v1197_v2 }
 0x233   :  { %v784_v7 = vrot.slane %v783_v5, 1  ;;  %857 = vperm.xlu1 %1174, %v1527_v10   ;;  %861 = vperm.xlu2 %1175, %v1515_v32  }
 0x234   :  { %1176 = vset.pattern.permute.xlu0 %v1197_v2 }
 0x235   :  { %v785_v11 = vadd.f32 %v784_v7, %v783_v5 }
 0x237   :  { %v786_v21 = vmul.f32 %v785_v11, %v1569_v22 }
 0x239   :  { %v787_v26 = vsub.f32 %v1603_v58, %v786_v21  ;;  %v788_v27 = vsub.f32 %v1601_v57, %v786_v21  ;;  %v908_v21 = vsub.f32 %v873_v29, %v1624_v59 }
 0x23b   :  { %v789_v31 = vmul.f32 %v787_v26, %v787_v26  ;;  %v790_v34 = vmul.f32 %v788_v27, %v788_v27 }
 0x23d   :  { %v791_v38 = vsel %vm478_vm1, %v790_v34, 0.0 }
 0x23e   :  { %v792_v40 = vadd.f32 %v791_v38, %v789_v31  ;;  %v909_v38 = vand.u32 4294901760, %v908_v21 }
 0x240   :  { %v793_v45 = vrot.slane %v792_v40, 4  ;;  %v910_v32 = vsub.f32 %v908_v21, %v909_v38 }
 0x242   :  { %v794_v13 = vadd.f32 %v793_v45, %v792_v40 }
 0x244   :  { %v795_v18 = vrot.slane %v794_v13, 2 }
 0x246   :  { %v796_v46 = vadd.f32 %v795_v18, %v794_v13 }
 0x248   :  { %v797_v14 = vrot.slane %v796_v46, 1 }
 0x24a   :  { %v798_v16 = vadd.f32 %v797_v14, %v796_v46 }
 0x24c   :  { %v799_v19 = vmul.f32 %v798_v16, %v1575_v25  ;;  %v853_v25 = vld [vmem:[%s1713_s2] sm:$0xff] }
 0x24d   :  { %v870_v43 = vsel %vm578_vm6, %v853_v25, 0 }
 0x24e   :  { %1185 = vrsqrt.f32 %v799_v19  ;;  %vm807_vm11 = vcmp.eq.f32.partialorder %v799_v19, inf  ;;  %v810_v9 = vand.u32 2147483648, %v799_v19  ;;  %vm809_vm12 = vcmp.eq.f32.partialorder %v799_v19, 0.0 }
 0x24f   :  { %v1617_v54 = vand.u32 4294901760, %v870_v43 }
 0x251   :  { %v900_v15 = vsub.f32 %v870_v43, %v1617_v54 }
 0x253   :  { %v901_v51 = vand.u32 4294901760, %v900_v15 }
 0x254   :  { %v1186_v24 = vpop.eup %1185 }
 0x255   :  { %v801_v22 = vmul.f32 %v1186_v24, %v799_v19  ;;  %v902_v11 = vsub.f32 %v900_v15, %v901_v51 }
 0x257   :  { %v802_v8 = vmul.f32 %v1186_v24, %v801_v22  ;;  %v903_v34 = vand.u32 4294901760, %v902_v11 }
 0x259   :  { %v803_v48 = vmul.f32 0.5, %v802_v8  ;;  %v38_v8 = vld [vmem:[%s1711_s3 + $0x10] sm:$0xff] }
 0x25a   :  { %866 = vperm.xlu1 %1174, %v38_v8  }
 0x25b   :  { %v804_v49 = vsub.f32 1.5, %v803_v48 }
 0x25d   :  { %v805_v53 = vmul.f32 %v1186_v24, %v804_v49 }
 0x25f   :  { %v806_v55 = vmul.f32 %v805_v53, %v799_v19 }
 0x261   :  { %v808_v12 = vsel %vm807_vm11, %v799_v19, %v806_v55  ;;  %v911_v19 = vand.u32 4294901760, %v910_v32 }
 0x262   :  { %v811_v20 = vsel %vm809_vm12, %v810_v9, %v808_v12 }
 0x263   :  { %v812_v28 = vadd.f32 1e-06, %v811_v20 }
 0x265   :  { %1187 = vrcp.f32 %v812_v28  ;;  %v824_v42 = vand.u32 2147483648, %v812_v28  ;;  %v822_v50 = vand.u32 2147483647, %v812_v28  ;;  %vm818_vm14 = vweird.f32 %v812_v28 }
 0x267   :  { %v825_v56 = vor.u32 1.1754944e-38, %v824_v42  ;;  %vm823_vm2 = vcmp.eq.f32.partialorder %v822_v50, 8.507059e+37 }
 0x26b   :  { %v1188_v33 = vpop.eup %1187 }
 0x26c   :  { %v814_v36 = vmul.f32 %v1188_v33, %v812_v28  ;;  %vm819_vm13 = vweird.f32 %v1188_v33 }
 0x26d   :  { %vm820_vm15 = vmor %vm818_vm14, %vm819_vm13 }
 0x26e   :  { %v815_v39 = vsub.f32 1.0, %v814_v36 }
 0x270   :  { %v816_v47 = vmul.f32 %v1188_v33, %v815_v39 }
 0x272   :  { %v817_v52 = vadd.f32 %v1188_v33, %v816_v47 }
 0x274   :  { %v821_v60 = vsel %vm820_vm15, %v1188_v33, %v817_v52 }
 0x275   :  { %v826_v63 = vsel %vm823_vm2, %v825_v56, %v821_v60 }
 0x276   :  { %v828_v3 = vmul.f32 %v826_v63, %v788_v27  ;;  %v827_v6 = vmul.f32 %v826_v63, %v787_v26 }
 0x278   :  { %v838_v30 = vmul.f32 %v835_v35, %v828_v3  ;;  %v837_v37 = vmul.f32 %v831_v4, %v827_v6 }
 0x27a   :  { %v848_v41 = vadd.f32 %v845_v17, %v838_v30  ;;  %v847_v44 = vadd.f32 %v841_v23, %v837_v37 }
 0x27c   :  { %v850_v62 = vadd.f32 %v848_v41, %v1601_v57  ;;  %v849_v0 = vadd.f32 %v847_v44, %v1603_v58  ;;  %v876_v57 = vsel %vm578_vm6, %v855_v1, 0 }
 0x27d   :  { %v915_v40 = vand.u32 4294901760, %v876_v57 }
 0x27e   :  { %v852_v5 = vmax.f32 %v850_v62, 0.0  ;;  %v851_v7 = vmax.f32 %v849_v0, 0.0 }
 0x27f   :  { %v916_v18 = vsub.f32 %v876_v57, %v915_v40 }
 0x280   :  { %v879_v58 = vsel %vm478_vm1, %v852_v5, 0  ;;  %v897_v26 = vand.u32 4294901760, %v851_v7 }
 0x281   :  { %v895_v27 = vand.u32 4294901760, %v879_v58  ;;  %v917_v24 = vand.u32 4294901760, %v916_v18 }
 0x282   :  { %v945_v31 = vsub.f32 %v851_v7, %v897_v26 }
 0x283   :  { %v939_v45 = vsub.f32 %v879_v58, %v895_v27  ;;  %896 = vmatpush.msra.mxu2 %v895_v27  ;;  %1014 = vmatpush.msra.mxu1 %v895_v27  ;;  %v918_v48 = vsub.f32 %v916_v18, %v917_v24 }
 0x284   :  { %v946_v13 = vand.u32 4294901760, %v945_v31 }
 0x285   :  { %898 = vmatpush.msra.mxu2 %v897_v26  ;;  %979 = vmatpush.msra.mxu0 %v939_v45  ;;  %v940_v10 = vand.u32 4294901760, %v939_v45  ;;  %v919_v49 = vand.u32 4294901760, %v918_v48 }
 0x286   :  { %1016 = vmatpush.msra.mxu1 %v897_v26  ;;  %904 = vmatmul.f32.vlgmr.msra.gmra.mxu2 %v903_v34  ;;  %v947_v14 = vsub.f32 %v945_v31, %v946_v13 }
 0x287   :  { %982 = vmatpush.msra.mxu0 %v945_v31  ;;  %1053 = vmatpush.msrb.mxu2 %v940_v10  ;;  %v941_v46 = vsub.f32 %v939_v45, %v940_v10 }
 0x288   :  { %985 = vmatmul.f32.vlgmr.msra.gmra.mxu0 %v900_v15  ;;  %1020 = vmatmul.f32.vlgmr.msra.gmra.mxu1 %v901_v51  ;;  %v948_v22 = vand.u32 4294901760, %v947_v14 }
 0x289   :  { %1057 = vmatpush.msrb.mxu2 %v946_v13  ;;  %v942_v16 = vand.u32 4294901760, %v941_v46 }
 0x28b   :  { %943 = vmatpush.msra.mxu3 %v942_v16 }
 0x28d   :  { %949 = vmatpush.msra.mxu3 %v948_v22  ;;  %v862_v39 = vpop.permute.xlu2 %861 }
 0x28e   :  { %951 = vmatmul.f32.vlgmr.msra.gmra.mxu3 %v1617_v54  ;;  %912 = vmatmul.f32.gmra.mxu2 %v911_v19 }
 0x28f   :  { %1086 = vmatpush.msrb.mxu3 %v895_v27 }
 0x290   :  { %990 = vmatmul.f32.gmra.mxu0 %v908_v21  ;;  %1026 = vmatmul.f32.gmra.mxu1 %v909_v38 }
 0x291   :  { %1088 = vmatpush.msrb.mxu3 %v897_v26 }
 0x296   :  { %955 = vmatmul.f32.gmra.mxu3 %v1624_v59  ;;  %920 = vmatmul.f32.gmra.mxu2 %v919_v49 }
 0x298   :  { %995 = vmatmul.f32.gmra.mxu0 %v916_v18  ;;  %1032 = vmatmul.f32.gmra.mxu1 %v917_v24 }
 0x29e   :  { %959 = vmatmul.f32.gmra.mxu3 %v915_v40  ;;  %1059 = vmatmul.f32.vlgmr.msrb.gmra.mxu2 %v1617_v54 }
 0x2a5   :  { %v858_v12 = vpop.permute.xlu1 %857 }
 0x2a6   :  { %1090 = vmatmul.f32.vlgmr.msrb.gmra.mxu3 %v1617_v54  ;;  %1063 = vmatmul.f32.gmra.mxu2 %v1624_v59 }
 0x2ae   :  { %1094 = vmatmul.f32.gmra.mxu3 %v1624_v59  ;;  %1067 = vmatmul.f32.gmra.mxu2 %v915_v40 }
 0x2b6   :  { %1098 = vmatmul.f32.gmra.mxu3 %v915_v40 }
 0x2cc   :  { %v867_v60 = vpop.permute.xlu1 %866 }
 0x305   :  { %v986_v35 = vpop.f32.mrf.mxu0  ;;  %v1021_v25 = vpop.f32.mrf.mxu1 }
 0x309   :  { %v905_v53 = vpop.f32.mrf.mxu2 }
 0x30a   :  { %v906_v33 = vadd.f32 %v905_v53, %v858_v12 }
 0x30d   :  { %v991_v52 = vpop.f32.mrf.mxu0  ;;  %v1027_v3 = vpop.f32.mrf.mxu1 }
 0x311   :  { %v952_v55 = vpop.f32.mrf.mxu3  ;;  %v913_v9 = vpop.f32.mrf.mxu2 }
 0x312   :  { %v953_v36 = vadd.f32 %v952_v55, %v906_v33  ;;  %v914_v50 = vadd.f32 %v913_v9, %v862_v39 }
 0x314   :  { %v987_v47 = vadd.f32 %v986_v35, %v953_v36 }
 0x315   :  { %v996_v30 = vpop.f32.mrf.mxu0  ;;  %v1033_v59 = vpop.f32.mrf.mxu1 }
 0x316   :  { %v1022_v54 = vadd.f32 %v1021_v25, %v987_v47 }
 0x319   :  { %v956_v20 = vpop.f32.mrf.mxu3  ;;  %v921_v28 = vpop.f32.mrf.mxu2 }
 0x31a   :  { %v957_v56 = vadd.f32 %v956_v20, %v914_v50  ;;  %v922_v15 = vadd.f32 %v921_v28, %v867_v60 }
 0x31c   :  { %v992_v4 = vadd.f32 %v991_v52, %v957_v56 }
 0x31e   :  { %v1028_v23 = vadd.f32 %v1027_v3, %v992_v4 }
 0x321   :  { %v960_v42 = vpop.f32.mrf.mxu3  ;;  %v1060_v43 = vpop.f32.mrf.mxu2 }
 0x322   :  { %v1061_v61 = vadd.f32 %v1060_v43, %v1022_v54  ;;  %v961_v29 = vadd.f32 %v960_v42, %v922_v15 }
 0x324   :  { %v997_v44 = vadd.f32 %v996_v30, %v961_v29 }
 0x326   :  { %v1034_v0 = vadd.f32 %v1033_v59, %v997_v44 }
 0x329   :  { %v1091_v63 = vpop.f32.mrf.mxu3  ;;  %v1064_v17 = vpop.f32.mrf.mxu2 }
 0x32a   :  { %v1092_v6 = vadd.f32 %v1091_v63, %v1061_v61  ;;  %v1065_v37 = vadd.f32 %v1064_v17, %v1028_v23 }
 0x32c   :  { %1102 = vxpose.xlu2.b32.start [1/3] (short) %v1092_v6, 128 }
 0x331   :  { %v1095_v41 = vpop.f32.mrf.mxu3  ;;  %v1068_v62 = vpop.f32.mrf.mxu2 }
 0x332   :  { %v1096_v51 = vadd.f32 %v1095_v41, %v1065_v37  ;;  %v1069_v1 = vadd.f32 %v1068_v62, %v1034_v0 }
 0x334   :  { %1103 = vxpose.xlu2.b32.cont [2/3] (short) %v1096_v51, 128 }
 0x339   :  { %v1099_v2 = vpop.f32.mrf.mxu3 }
 0x33a   :  { %v1100_v5 = vadd.f32 %v1099_v2, %v1069_v1 }
 0x33c   :  { %1104 = vxpose.xlu2.b32.end [3/3] (short) %v1100_v5, 128 }
 0x3c5   :  { %v1118_v7 = vpop.trf.xlu2 }
 0x3c6   :  { %1134 = vst.msk [vmem:[%s1714_s5] sm:$0xff] %vm51_vm0, %v1118_v7 }
 0x3cd   :  { %v1119_v11 = vpop.trf.xlu2 }
 0x3ce   :  { %1135 = vst.msk [vmem:[%s1714_s5 + $0x8] sm:$0xff] %vm51_vm0, %v1119_v11 }
 0x3d5   :  { %v1120_v21 = vpop.trf.xlu2 }
 0x3d6   :  { %1136 = vst.msk [vmem:[%s1714_s5 + $0x10] sm:$0xff] %vm51_vm0, %v1120_v21 }
 0x3dd   :  { %v1121_v57 = vpop.trf.xlu2 }
 0x3de   :  { %1137 = vst.msk [vmem:[%s1714_s5 + $0x18] sm:$0xff] %vm51_vm0, %v1121_v57 }
 0x3e5   :  { %v1122_v58 = vpop.trf.xlu2 }
 0x3e6   :  { %1138 = vst.msk [vmem:[%s1714_s5 + $0x20] sm:$0xff] %vm51_vm0, %v1122_v58 }
 0x3ed   :  { %v1123_v26 = vpop.trf.xlu2 }
 0x3ee   :  { %1139 = vst.msk [vmem:[%s1714_s5 + $0x28] sm:$0xff] %vm51_vm0, %v1123_v26 }
 0x3f5   :  { %v1124_v27 = vpop.trf.xlu2 }
 0x3f6   :  { %1140 = vst.msk [vmem:[%s1714_s5 + $0x30] sm:$0xff] %vm51_vm0, %v1124_v27 }
 0x3fd   :  { %v1125_v31 = vpop.trf.xlu2 }
 0x3fe   :  { %1141 = vst.msk [vmem:[%s1714_s5 + $0x38] sm:$0xff] %vm51_vm0, %v1125_v31 }
 0x405   :  { %v1126_v34 = vpop.trf.xlu2 }
 0x406   :  { %1142 = vst.msk [vmem:[%s1714_s5 + $0x40] sm:$0xff] %vm51_vm0, %v1126_v34 }
 0x40d   :  { %v1127_v38 = vpop.trf.xlu2 }
 0x40e   :  { %1143 = vst.msk [vmem:[%s1714_s5 + $0x48] sm:$0xff] %vm51_vm0, %v1127_v38 }
 0x415   :  { %v1128_v40 = vpop.trf.xlu2 }
 0x416   :  { %1144 = vst.msk [vmem:[%s1714_s5 + $0x50] sm:$0xff] %vm51_vm0, %v1128_v40 }
 0x41d   :  { %v1129_v45 = vpop.trf.xlu2 }
 0x41e   :  { %1145 = vst.msk [vmem:[%s1714_s5 + $0x58] sm:$0xff] %vm51_vm0, %v1129_v45 }
 0x425   :  { %v1130_v13 = vpop.trf.xlu2 }
 0x426   :  { %1146 = vst.msk [vmem:[%s1714_s5 + $0x60] sm:$0xff] %vm51_vm0, %v1130_v13 }
 0x42d   :  { %v1131_v10 = vpop.trf.xlu2 }
 0x42e   :  { %1147 = vst.msk [vmem:[%s1714_s5 + $0x68] sm:$0xff] %vm51_vm0, %v1131_v10 }
 0x435   :  { %v1132_v32 = vpop.trf.xlu2 }
 0x436   :  { %1148 = vst.msk [vmem:[%s1714_s5 + $0x70] sm:$0xff] %vm51_vm0, %v1132_v32 }
 0x43d   :  { %v1133_v18 = vpop.trf.xlu2 }
 0x43e   :  { %1149 = vst.msk [vmem:[%s1714_s5 + $0x78] sm:$0xff] %vm51_vm0, %v1133_v18 }

</bundles_post_ra>
